<compile_context>
chip_gen: v7x
topology: tpu7x:2x2x1
jax: 0.10.0
libtpu: 0.0.40
codegen_flags: <defaults>
</compile_context>

<pallas_src>
import functools

import jax
import jax.numpy as jnp
from jax import lax
from jax.experimental import pallas as pl
from jax.experimental.pallas import tpu as pltpu


def _round_up(x, m):
    return ((x + m - 1) // m) * m


def _vmem_capacity_bytes():
    try:
        return int(pltpu.get_tpu_info().vmem_capacity_bytes)
    except Exception:
        return 64 << 20          # conservative fallback (v7x per-TC VMEM)


def _default_feat_dtype():
    # bf16 add/tanh only where the VPU/EUP natively support bf16 (v6e, v7x).
    # v5e and older have no bf16 vector units -> keep f32 there.
    try:
        kind = jax.devices()[0].device_kind.lower()
    except Exception:
        return jnp.float32
    if "v6" in kind or "v7" in kind or "7x" in kind:
        return jnp.bfloat16
    return jnp.float32


def _additive_attn_kernel(qh_ref, kht_ref, v_ref, wv_ref, o_ref,
                          m_sc, l_sc, acc_sc, *, hc, lk_valid, mask_keys):
    # Per-grid-step views:
    #   qh_ref : (bb, tq, Hp)    projected queries (feat dtype)
    #   kht_ref: (bb, Hp, tk)    projected keys, transposed (H on sublanes)
    #   v_ref  : (bb, tk, Dv)    values (matmul dtype)
    #   wv_ref : (Hp, 1)         W_v weight, f32
    #   o_ref  : (bb, tq, Dv)
    #   m_sc/l_sc: (bb, tq, 1)   f32 online-softmax stats
    #   acc_sc   : (bb, tq, Dv)  f32 output accumulator
    bb, tq, hp = qh_ref.shape
    tk = kht_ref.shape[-1]
    ki = pl.program_id(2)

    @pl.when(ki == 0)
    def _init():
        m_sc[...] = jnp.full(m_sc.shape, -jnp.inf, dtype=m_sc.dtype)
        l_sc[...] = jnp.zeros(l_sc.shape, dtype=l_sc.dtype)
        acc_sc[...] = jnp.zeros(acc_sc.shape, dtype=acc_sc.dtype)

    # wv lane-broadcast hoisted out of the H-chunk loop (JAX does not CSE
    # broadcast_in_dim; leaving it inside would re-broadcast every chunk).
    wv_b = jnp.broadcast_to(wv_ref[...].astype(jnp.float32), (hp, tk))  # [Hp, tk]

    # --- scores: statically-unrolled accumulation over H chunks --------------
    # Never materializes the full [bb, tq, Hp, tk] feature tensor; each chunk's
    # tanh output is consumed immediately into the f32 score accumulator.
    scores = jnp.zeros((bb, tq, tk), jnp.float32)
    for c in range(hp // hc):
        h0 = c * hc                                          # static slices
        qh_c = qh_ref[:, :, h0:h0 + hc]                      # [bb, tq, hc]
        kht_c = kht_ref[:, h0:h0 + hc, :]                    # [bb, hc, tk]
        # additive features for this chunk (bf16 on v6e/v7x, f32 on v5e)
        feats = jnp.tanh(qh_c[:, :, :, None] + kht_c[:, None, :, :])
        # wv-weighted sublane reduction; bf16*f32 promotes so the sum stays f32.
        scores = scores + jnp.sum(
            feats * wv_b[h0:h0 + hc, :][None, None, :, :], axis=2)

    if mask_keys:   # static: only emitted when Lk was padded to the tile grid
        kidx = ki * tk + lax.broadcasted_iota(jnp.int32, (1, 1, tk), 2)
        scores = jnp.where(kidx < lk_valid, scores, -jnp.inf)

    # --- flash-style online softmax over the key-tile grid axis --------------
    m_prev = m_sc[...]                                           # [bb, tq, 1]
    m_new = jnp.maximum(m_prev, jnp.max(scores, axis=-1, keepdims=True))
    alpha = jnp.exp(m_prev - m_new)
    p = jnp.exp(scores - m_new)                                  # [bb, tq, tk]
    l_sc[...] = alpha * l_sc[...] + jnp.sum(p, axis=-1, keepdims=True)
    # bf16 p/v on v6e/v7x hits the native MXU path; accumulation stays f32.
    acc_sc[...] = alpha * acc_sc[...] + jnp.einsum(
        "bqk,bkd->bqd", p.astype(v_ref.dtype), v_ref[...],
        preferred_element_type=jnp.float32)
    m_sc[...] = m_new

    @pl.when(ki == pl.num_programs(2) - 1)
    def _finalize():
        # Dropout = identity (eval mode).
        l = l_sc[...]
        inv_l = pl.reciprocal(l, approx=True)        # EUP slot (near free)
        inv_l = inv_l * (2.0 - l * inv_l)            # Newton step -> f32 accuracy
        o_ref[...] = (acc_sc[...] * inv_l).astype(o_ref.dtype)


def additive_attention(q, k, v, wq, wk, wv, *, bb=None, tq=None, tk=None,
                       hc=8, feat_dtype=None):
    """q:[B,Lq,Dq] k:[B,Lk,Dk] v:[B,Lk,Dv] wq:[Dq,H] wk:[Dk,H] wv:[1,H] -> [B,Lq,Dv]"""
    B, Lq, Dq = q.shape
    _, Lk, Dk = k.shape
    Dv = v.shape[-1]
    H = wq.shape[-1]

    if feat_dtype is None:
        feat_dtype = _default_feat_dtype()
    feat_dtype = jnp.dtype(feat_dtype)
    mm_dtype = jnp.dtype(jnp.bfloat16) if feat_dtype == jnp.dtype(jnp.bfloat16) \
        else jnp.dtype(v.dtype)

    vmem_cap = _vmem_capacity_bytes()
    vmem_limit = int(max(32 << 20, min(vmem_cap * 3 // 4, 96 << 20)))

    hp = _round_up(H, hc)

    # ---- tile selection (generation-aware VMEM budget) ----
    if tq is None:
        tq = _round_up(Lq, 8) if Lq <= 128 else 128
    else:
        tq = _round_up(tq, 8)
    lq_pad = _round_up(Lq, tq)

    if bb is None:
        bb = max(1, min(B, 128 // max(tq, 1)))     # fold batch so bb*tq >~ 128
        # keep >= 2 steps on the parallel (batch, query) grid axes when
        # possible so v7x's second TensorCore has work to shard.
        while bb > 1 and (B // bb) * (lq_pad // tq) < 2:
            bb -= 1
    bb = max(1, min(bb, B))
    while B % bb:
        bb -= 1

    feat_item = feat_dtype.itemsize
    mm_item = mm_dtype.itemsize
    if tk is None:
        if Lk <= 128:
            tk = _round_up(Lk, 8)
        else:
            tk = 128
            # Larger key tiles amortize the ~0.35us/step overhead and the
            # per-tile online-softmax rescales; budget against this
            # generation's VMEM (64 MiB/TC on v7x, 128 MiB on v5e/v6e).
            budget = vmem_limit // 4
            for cand in (256, 512):
                if Lk < cand:
                    break
                ws = (bb * tq * cand * 4                  # scores acc (f32)
                      + bb * tq * hc * cand * feat_item   # live feats chunk
                      + 2 * bb * hp * cand * feat_item    # kht tile (dbl-buffered)
                      + 2 * bb * cand * Dv * mm_item)     # v tile (dbl-buffered)
                if ws <= budget:
                    tk = cand
    else:
        tk = _round_up(tk, 128) if tk < Lk else _round_up(tk, 8)
    lk_pad = _round_up(Lk, tk)
    mask_keys = lk_pad != Lk

    # ---- projections hoisted to XLA (full-batch matmuls feed the MXU) ----
    # kht is produced already transposed so the kernel sees H on sublanes /
    # keys on lanes (cheap sublane contraction with w_v, lane-dense scores).
    qh = jnp.einsum("bqd,dh->bqh", q, wq).astype(feat_dtype)    # [B, Lq, H]
    kht = jnp.einsum("bkd,dh->bhk", k, wk).astype(feat_dtype)   # [B, H, Lk]
    qh = jnp.pad(qh, ((0, 0), (0, lq_pad - Lq), (0, hp - H)))
    kht = jnp.pad(kht, ((0, 0), (0, hp - H), (0, lk_pad - Lk)))
    v_p = jnp.pad(v, ((0, 0), (0, lk_pad - Lk), (0, 0))).astype(mm_dtype)
    wv_col = jnp.pad(wv.reshape(H, 1).astype(jnp.float32), ((0, hp - H), (0, 0)))

    grid = (B // bb, lq_pad // tq, lk_pad // tk)

    kernel = functools.partial(_additive_attn_kernel, hc=hc,
                               lk_valid=Lk, mask_keys=mask_keys)

    out = pl.pallas_call(
        kernel,
        out_shape=jax.ShapeDtypeStruct((B, lq_pad, Dv), q.dtype),
        grid_spec=pltpu.PrefetchScalarGridSpec(
            num_scalar_prefetch=0,
            grid=grid,
            in_specs=[
                pl.BlockSpec((bb, tq, hp), lambda b, qi, ki: (b, qi, 0)),
                pl.BlockSpec((bb, hp, tk), lambda b, qi, ki: (b, 0, ki)),
                pl.BlockSpec((bb, tk, Dv), lambda b, qi, ki: (b, ki, 0)),
                pl.BlockSpec((hp, 1), lambda b, qi, ki: (0, 0)),
            ],
            out_specs=pl.BlockSpec((bb, tq, Dv), lambda b, qi, ki: (b, qi, 0)),
            scratch_shapes=[
                pltpu.VMEM((bb, tq, 1), jnp.float32),    # running max
                pltpu.VMEM((bb, tq, 1), jnp.float32),    # running sum
                pltpu.VMEM((bb, tq, Dv), jnp.float32),   # output accumulator
            ],
        ),
        compiler_params=pltpu.CompilerParams(
            dimension_semantics=("parallel", "parallel", "arbitrary"),
            vmem_limit_bytes=vmem_limit),
    )(qh, kht, v_p, wv_col)
    return out[:, :Lq, :]


def additive_attention_ref(q, k, v, wq, wk, wv):
    qh = jnp.einsum("bqd,dh->bqh", q, wq)
    kh = jnp.einsum("bkd,dh->bkh", k, wk)
    feats = jnp.tanh(qh[:, :, None, :] + kh[:, None, :, :])
    scores = jnp.einsum("bqkh,h->bqk", feats, wv[0])
    attn = jax.nn.softmax(scores, axis=-1)
    return jnp.einsum("bqk,bkd->bqd", attn, v)


if __name__ == "__main__":
    def run_case(B, Lq, Lk, Dq, Dk, H, Dv, atol=1e-4, rtol=1e-4, **kw):
        key = jax.random.PRNGKey(0)
        k1, k2, k3, k4, k5, k6 = jax.random.split(key, 6)
        q = jax.random.normal(k1, (B, Lq, Dq), dtype=jnp.float32)
        k = jax.random.normal(k2, (B, Lk, Dk), dtype=jnp.float32)
        v = jax.random.normal(k3, (B, Lk, Dv), dtype=jnp.float32)
        # PyTorch-style uniform(-1/sqrt(in), 1/sqrt(in)); stored transposed
        # ([in, out]) for the wrapper.
        wq = jax.random.uniform(k4, (Dq, H), jnp.float32, -1.0 / Dq ** 0.5, 1.0 / Dq ** 0.5)
        wk = jax.random.uniform(k5, (Dk, H), jnp.float32, -1.0 / Dk ** 0.5, 1.0 / Dk ** 0.5)
        wv = jax.random.uniform(k6, (1, H), jnp.float32, -1.0 / H ** 0.5, 1.0 / H ** 0.5)

        out = jax.block_until_ready(additive_attention(q, k, v, wq, wk, wv, **kw))
        ref = additive_attention_ref(q, k, v, wq, wk, wv)
        assert out.shape == (B, Lq, Dv)
        err = float(jnp.max(jnp.abs(out - ref)))
        assert jnp.allclose(out, ref, atol=atol, rtol=rtol), (
            f"kernel mismatch vs reference (max abs err {err})")

    # 1) Module-sized demo (single key tile), f32 everywhere.
    run_case(B=2, Lq=8, Lk=8, Dq=16, Dk=16, H=32, Dv=32,
             feat_dtype=jnp.float32)
    # 2) Multi-key-tile online softmax + ragged Lk (padded + masked keys), f32.
    run_case(B=2, Lq=16, Lk=200, Dq=16, Dk=16, H=32, Dv=32,
             tk=128, feat_dtype=jnp.float32)
    # 3) bf16 add/tanh + bf16 attn@v fast path (v6e/v7x); looser tolerance.
    run_case(B=2, Lq=16, Lk=256, Dq=16, Dk=16, H=32, Dv=32,
             tk=128, feat_dtype=jnp.bfloat16, atol=5e-2, rtol=5e-2)

    print("KERNEL_OK")
</pallas_src>

<mosaic_0001>
module attributes {stable_mosaic.version = 11 : i64} {
  func.func @_additive_attn_kernel(%arg0: i32, %arg1: i32, %arg2: i32, %arg3: memref<1x8x32xf32, #tpu.memory_space<vmem>>, %arg4: memref<1x32x8xf32, #tpu.memory_space<vmem>>, %arg5: memref<1x8x32xf32, #tpu.memory_space<vmem>>, %arg6: memref<32x1xf32, #tpu.memory_space<vmem>>, %arg7: memref<1x8x32xf32, #tpu.memory_space<vmem>>, %arg8: memref<1x8x1xf32, #tpu.memory_space<vmem>>, %arg9: memref<1x8x1xf32, #tpu.memory_space<vmem>>, %arg10: memref<1x8x32xf32, #tpu.memory_space<vmem>>) attributes {dimension_semantics = [#tpu.dimension_semantics<parallel>, #tpu.dimension_semantics<parallel>, #tpu.dimension_semantics<arbitrary>], iteration_bounds = array<i64: 2, 1, 1>, scalar_prefetch = 0 : i64, scratch_operands = 3 : i64, tpu.core_type = #tpu.core_type<tc>, window_params = [{transform_indices = @transform_0, window_bounds = array<i64: 1, 8, 32>}, {transform_indices = @transform_1, window_bounds = array<i64: 1, 32, 8>}, {transform_indices = @transform_2, window_bounds = array<i64: 1, 8, 32>}, {pipeline_mode = #tpu.pipeline_mode<synchronous>, transform_indices = @transform_3, window_bounds = array<i64: 32, 1>}, {transform_indices = @transform_4, window_bounds = array<i64: 1, 8, 32>}]} {
    %c0_i32 = arith.constant 0 : i32
    %0 = arith.cmpi eq, %arg2, %c0_i32 : i32
    %1 = arith.extui %0 : i1 to i32
    %c0_i32_0 = arith.constant 0 : i32
    %2 = arith.cmpi ne, %1, %c0_i32_0 : i32
    scf.if %2 {
      %cst_53 = arith.constant 0xFF800000 : f32
      %89 = vector.broadcast %cst_53 : f32 to vector<1x8x1xf32>
      %c0_54 = arith.constant 0 : index
      %c0_55 = arith.constant 0 : index
      %c0_56 = arith.constant 0 : index
      %90 = vector.load %arg8[%c0_54, %c0_55, %c0_56] : memref<1x8x1xf32, #tpu.memory_space<vmem>>, vector<1x8x1xf32>
      tpu.vector_store %arg8[%c0_54, %c0_55, %c0_56], %89 {strides = array<i32>} : memref<1x8x1xf32, #tpu.memory_space<vmem>>, vector<1x8x1xf32>,
      %cst_57 = arith.constant 0.000000e+00 : f32
      %91 = vector.broadcast %cst_57 : f32 to vector<1x8x1xf32>
      %c0_58 = arith.constant 0 : index
      %c0_59 = arith.constant 0 : index
      %c0_60 = arith.constant 0 : index
      %92 = vector.load %arg9[%c0_58, %c0_59, %c0_60] : memref<1x8x1xf32, #tpu.memory_space<vmem>>, vector<1x8x1xf32>
      tpu.vector_store %arg9[%c0_58, %c0_59, %c0_60], %91 {strides = array<i32>} : memref<1x8x1xf32, #tpu.memory_space<vmem>>, vector<1x8x1xf32>,
      %cst_61 = arith.constant 0.000000e+00 : f32
      %93 = vector.broadcast %cst_61 : f32 to vector<1x8x32xf32>
      %c0_62 = arith.constant 0 : index
      %c0_63 = arith.constant 0 : index
      %c0_64 = arith.constant 0 : index
      %94 = vector.load %arg10[%c0_62, %c0_63, %c0_64] : memref<1x8x32xf32, #tpu.memory_space<vmem>>, vector<1x8x32xf32>
      tpu.vector_store %arg10[%c0_62, %c0_63, %c0_64], %93 {strides = array<i32>} : memref<1x8x32xf32, #tpu.memory_space<vmem>>, vector<1x8x32xf32>,
    } else {
    }
    %c0 = arith.constant 0 : index
    %c0_1 = arith.constant 0 : index
    %3 = vector.load %arg6[%c0, %c0_1] : memref<32x1xf32, #tpu.memory_space<vmem>>, vector<32x1xf32>
    %4 = vector.shape_cast %3 : vector<32x1xf32> to vector<32x1xf32>
    %5 = vector.broadcast %4 : vector<32x1xf32> to vector<32x8xf32>
    %cst = arith.constant 0.000000e+00 : f32
    %6 = vector.broadcast %cst : f32 to vector<1x8x8xf32>
    %c0_2 = arith.constant 0 : index
    %c0_3 = arith.constant 0 : index
    %c0_4 = arith.constant 0 : index
    %7 = vector.load %arg3[%c0_2, %c0_3, %c0_4] : memref<1x8x32xf32, #tpu.memory_space<vmem>>, vector<1x8x8xf32>
    %c0_5 = arith.constant 0 : index
    %c0_6 = arith.constant 0 : index
    %c0_7 = arith.constant 0 : index
    %8 = vector.load %arg4[%c0_5, %c0_6, %c0_7] : memref<1x32x8xf32, #tpu.memory_space<vmem>>, vector<1x8x8xf32>
    %9 = vector.shape_cast %7 : vector<1x8x8xf32> to vector<1x8x8x1xf32>
    %10 = vector.shape_cast %8 : vector<1x8x8xf32> to vector<1x1x8x8xf32>
    %11 = vector.broadcast %9 : vector<1x8x8x1xf32> to vector<1x8x8x8xf32>
    %12 = vector.broadcast %10 : vector<1x1x8x8xf32> to vector<1x8x8x8xf32>
    %13 = arith.addf %11, %12 : vector<1x8x8x8xf32>
    %14 = math.tanh %13 : vector<1x8x8x8xf32>
    %15 = vector.extract_strided_slice %5 {offsets = [0, 0], sizes = [8, 8], strides = [1, 1]} : vector<32x8xf32> to vector<8x8xf32>
    %16 = vector.shape_cast %15 : vector<8x8xf32> to vector<1x1x8x8xf32>
    %17 = vector.broadcast %16 : vector<1x1x8x8xf32> to vector<1x8x8x8xf32>
    %18 = arith.mulf %14, %17 : vector<1x8x8x8xf32>
    %cst_8 = arith.constant dense<0.000000e+00> : vector<1x8x8xf32>
    %19 = vector.multi_reduction <add>, %18, %cst_8 [2] : vector<1x8x8x8xf32> to vector<1x8x8xf32>
    %20 = arith.addf %6, %19 : vector<1x8x8xf32>
    %c0_9 = arith.constant 0 : index
    %c0_10 = arith.constant 0 : index
    %c8 = arith.constant 8 : index
    %21 = vector.load %arg3[%c0_9, %c0_10, %c8] : memref<1x8x32xf32, #tpu.memory_space<vmem>>, vector<1x8x8xf32>
    %c0_11 = arith.constant 0 : index
    %c8_12 = arith.constant 8 : index
    %c0_13 = arith.constant 0 : index
    %22 = vector.load %arg4[%c0_11, %c8_12, %c0_13] : memref<1x32x8xf32, #tpu.memory_space<vmem>>, vector<1x8x8xf32>
    %23 = vector.shape_cast %21 : vector<1x8x8xf32> to vector<1x8x8x1xf32>
    %24 = vector.shape_cast %22 : vector<1x8x8xf32> to vector<1x1x8x8xf32>
    %25 = vector.broadcast %23 : vector<1x8x8x1xf32> to vector<1x8x8x8xf32>
    %26 = vector.broadcast %24 : vector<1x1x8x8xf32> to vector<1x8x8x8xf32>
    %27 = arith.addf %25, %26 : vector<1x8x8x8xf32>
    %28 = math.tanh %27 : vector<1x8x8x8xf32>
    %29 = vector.extract_strided_slice %5 {offsets = [8, 0], sizes = [8, 8], strides = [1, 1]} : vector<32x8xf32> to vector<8x8xf32>
    %30 = vector.shape_cast %29 : vector<8x8xf32> to vector<1x1x8x8xf32>
    %31 = vector.broadcast %30 : vector<1x1x8x8xf32> to vector<1x8x8x8xf32>
    %32 = arith.mulf %28, %31 : vector<1x8x8x8xf32>
    %cst_14 = arith.constant dense<0.000000e+00> : vector<1x8x8xf32>
    %33 = vector.multi_reduction <add>, %32, %cst_14 [2] : vector<1x8x8x8xf32> to vector<1x8x8xf32>
    %34 = arith.addf %20, %33 : vector<1x8x8xf32>
    %c0_15 = arith.constant 0 : index
    %c0_16 = arith.constant 0 : index
    %c16 = arith.constant 16 : index
    %35 = vector.load %arg3[%c0_15, %c0_16, %c16] : memref<1x8x32xf32, #tpu.memory_space<vmem>>, vector<1x8x8xf32>
    %c0_17 = arith.constant 0 : index
    %c16_18 = arith.constant 16 : index
    %c0_19 = arith.constant 0 : index
    %36 = vector.load %arg4[%c0_17, %c16_18, %c0_19] : memref<1x32x8xf32, #tpu.memory_space<vmem>>, vector<1x8x8xf32>
    %37 = vector.shape_cast %35 : vector<1x8x8xf32> to vector<1x8x8x1xf32>
    %38 = vector.shape_cast %36 : vector<1x8x8xf32> to vector<1x1x8x8xf32>
    %39 = vector.broadcast %37 : vector<1x8x8x1xf32> to vector<1x8x8x8xf32>
    %40 = vector.broadcast %38 : vector<1x1x8x8xf32> to vector<1x8x8x8xf32>
    %41 = arith.addf %39, %40 : vector<1x8x8x8xf32>
    %42 = math.tanh %41 : vector<1x8x8x8xf32>
    %43 = vector.extract_strided_slice %5 {offsets = [16, 0], sizes = [8, 8], strides = [1, 1]} : vector<32x8xf32> to vector<8x8xf32>
    %44 = vector.shape_cast %43 : vector<8x8xf32> to vector<1x1x8x8xf32>
    %45 = vector.broadcast %44 : vector<1x1x8x8xf32> to vector<1x8x8x8xf32>
    %46 = arith.mulf %42, %45 : vector<1x8x8x8xf32>
    %cst_20 = arith.constant dense<0.000000e+00> : vector<1x8x8xf32>
    %47 = vector.multi_reduction <add>, %46, %cst_20 [2] : vector<1x8x8x8xf32> to vector<1x8x8xf32>
    %48 = arith.addf %34, %47 : vector<1x8x8xf32>
    %c0_21 = arith.constant 0 : index
    %c0_22 = arith.constant 0 : index
    %c24 = arith.constant 24 : index
    %49 = vector.load %arg3[%c0_21, %c0_22, %c24] : memref<1x8x32xf32, #tpu.memory_space<vmem>>, vector<1x8x8xf32>
    %c0_23 = arith.constant 0 : index
    %c24_24 = arith.constant 24 : index
    %c0_25 = arith.constant 0 : index
    %50 = vector.load %arg4[%c0_23, %c24_24, %c0_25] : memref<1x32x8xf32, #tpu.memory_space<vmem>>, vector<1x8x8xf32>
    %51 = vector.shape_cast %49 : vector<1x8x8xf32> to vector<1x8x8x1xf32>
    %52 = vector.shape_cast %50 : vector<1x8x8xf32> to vector<1x1x8x8xf32>
    %53 = vector.broadcast %51 : vector<1x8x8x1xf32> to vector<1x8x8x8xf32>
    %54 = vector.broadcast %52 : vector<1x1x8x8xf32> to vector<1x8x8x8xf32>
    %55 = arith.addf %53, %54 : vector<1x8x8x8xf32>
    %56 = math.tanh %55 : vector<1x8x8x8xf32>
    %57 = vector.extract_strided_slice %5 {offsets = [24, 0], sizes = [8, 8], strides = [1, 1]} : vector<32x8xf32> to vector<8x8xf32>
    %58 = vector.shape_cast %57 : vector<8x8xf32> to vector<1x1x8x8xf32>
    %59 = vector.broadcast %58 : vector<1x1x8x8xf32> to vector<1x8x8x8xf32>
    %60 = arith.mulf %56, %59 : vector<1x8x8x8xf32>
    %cst_26 = arith.constant dense<0.000000e+00> : vector<1x8x8xf32>
    %61 = vector.multi_reduction <add>, %60, %cst_26 [2] : vector<1x8x8x8xf32> to vector<1x8x8xf32>
    %62 = arith.addf %48, %61 : vector<1x8x8xf32>
    %c0_27 = arith.constant 0 : index
    %c0_28 = arith.constant 0 : index
    %c0_29 = arith.constant 0 : index
    %63 = vector.load %arg8[%c0_27, %c0_28, %c0_29] : memref<1x8x1xf32, #tpu.memory_space<vmem>>, vector<1x8x1xf32>
    %cst_30 = arith.constant dense<0xFF800000> : vector<1x8xf32>
    %64 = vector.multi_reduction <maximumf>, %62, %cst_30 [2] : vector<1x8x8xf32> to vector<1x8xf32>
    %65 = vector.shape_cast %64 : vector<1x8xf32> to vector<1x8x1xf32>
    %66 = arith.maximumf %63, %65 : vector<1x8x1xf32>
    %67 = arith.subf %63, %66 : vector<1x8x1xf32>
    %68 = math.exp %67 : vector<1x8x1xf32>
    %69 = vector.broadcast %66 : vector<1x8x1xf32> to vector<1x8x8xf32>
    %70 = arith.subf %62, %69 : vector<1x8x8xf32>
    %71 = math.exp %70 : vector<1x8x8xf32>
    %c0_31 = arith.constant 0 : index
    %c0_32 = arith.constant 0 : index
    %c0_33 = arith.constant 0 : index
    %72 = vector.load %arg9[%c0_31, %c0_32, %c0_33] : memref<1x8x1xf32, #tpu.memory_space<vmem>>, vector<1x8x1xf32>
    %73 = arith.mulf %68, %72 : vector<1x8x1xf32>
    %cst_34 = arith.constant dense<0.000000e+00> : vector<1x8xf32>
    %74 = vector.multi_reduction <add>, %71, %cst_34 [2] : vector<1x8x8xf32> to vector<1x8xf32>
    %75 = vector.shape_cast %74 : vector<1x8xf32> to vector<1x8x1xf32>
    %76 = arith.addf %73, %75 : vector<1x8x1xf32>
    %c0_35 = arith.constant 0 : index
    %c0_36 = arith.constant 0 : index
    %c0_37 = arith.constant 0 : index
    %77 = vector.load %arg9[%c0_35, %c0_36, %c0_37] : memref<1x8x1xf32, #tpu.memory_space<vmem>>, vector<1x8x1xf32>
    tpu.vector_store %arg9[%c0_35, %c0_36, %c0_37], %76 {strides = array<i32>} : memref<1x8x1xf32, #tpu.memory_space<vmem>>, vector<1x8x1xf32>,
    %c0_38 = arith.constant 0 : index
    %c0_39 = arith.constant 0 : index
    %c0_40 = arith.constant 0 : index
    %78 = vector.load %arg10[%c0_38, %c0_39, %c0_40] : memref<1x8x32xf32, #tpu.memory_space<vmem>>, vector<1x8x32xf32>
    %79 = vector.broadcast %68 : vector<1x8x1xf32> to vector<1x8x32xf32>
    %80 = arith.mulf %79, %78 : vector<1x8x32xf32>
    %c0_41 = arith.constant 0 : index
    %c0_42 = arith.constant 0 : index
    %c0_43 = arith.constant 0 : index
    %81 = vector.load %arg5[%c0_41, %c0_42, %c0_43] : memref<1x8x32xf32, #tpu.memory_space<vmem>>, vector<1x8x32xf32>
    "tpu.trace_start"() <{level = 10 : i32, message = "bqk,bkd->bqd"}> : () -> ()
    %cst_44 = arith.constant dense<0.000000e+00> : vector<1x8x32xf32>
    %82 = tpu.matmul %71, %81, %cst_44 {dimension_numbers = #tpu.dot_dimension_numbers<[2], [1], [1], [2], [0, 0, 0, 1, 1, 2], [0], [0]>} : vector<1x8x8xf32>, vector<1x8x32xf32>, vector<1x8x32xf32> -> vector<1x8x32xf32>
    "tpu.trace_stop"() : () -> ()
    %83 = arith.addf %80, %82 : vector<1x8x32xf32>
    %c0_45 = arith.constant 0 : index
    %c0_46 = arith.constant 0 : index
    %c0_47 = arith.constant 0 : index
    %84 = vector.load %arg10[%c0_45, %c0_46, %c0_47] : memref<1x8x32xf32, #tpu.memory_space<vmem>>, vector<1x8x32xf32>
    tpu.vector_store %arg10[%c0_45, %c0_46, %c0_47], %83 {strides = array<i32>} : memref<1x8x32xf32, #tpu.memory_space<vmem>>, vector<1x8x32xf32>,
    %c0_48 = arith.constant 0 : index
    %c0_49 = arith.constant 0 : index
    %c0_50 = arith.constant 0 : index
    %85 = vector.load %arg8[%c0_48, %c0_49, %c0_50] : memref<1x8x1xf32, #tpu.memory_space<vmem>>, vector<1x8x1xf32>
    tpu.vector_store %arg8[%c0_48, %c0_49, %c0_50], %66 {strides = array<i32>} : memref<1x8x1xf32, #tpu.memory_space<vmem>>, vector<1x8x1xf32>,
    %c0_i32_51 = arith.constant 0 : i32
    %86 = arith.cmpi eq, %arg2, %c0_i32_51 : i32
    %87 = arith.extui %86 : i1 to i32
    %c0_i32_52 = arith.constant 0 : i32
    %88 = arith.cmpi ne, %87, %c0_i32_52 : i32
    scf.if %88 {
      %c0_53 = arith.constant 0 : index
      %c0_54 = arith.constant 0 : index
      %c0_55 = arith.constant 0 : index
      %89 = vector.load %arg9[%c0_53, %c0_54, %c0_55] : memref<1x8x1xf32, #tpu.memory_space<vmem>>, vector<1x8x1xf32>
      %90 = tpu.reciprocal %89 {approx = true} : vector<1x8x1xf32> -> vector<1x8x1xf32>
      %91 = arith.mulf %89, %90 : vector<1x8x1xf32>
      %cst_56 = arith.constant 2.000000e+00 : f32
      %92 = vector.broadcast %cst_56 : f32 to vector<1x8x1xf32>
      %93 = arith.subf %92, %91 : vector<1x8x1xf32>
      %94 = arith.mulf %90, %93 : vector<1x8x1xf32>
      %c0_57 = arith.constant 0 : index
      %c0_58 = arith.constant 0 : index
      %c0_59 = arith.constant 0 : index
      %95 = vector.load %arg10[%c0_57, %c0_58, %c0_59] : memref<1x8x32xf32, #tpu.memory_space<vmem>>, vector<1x8x32xf32>
      %96 = vector.broadcast %94 : vector<1x8x1xf32> to vector<1x8x32xf32>
      %97 = arith.mulf %95, %96 : vector<1x8x32xf32>
      %c0_60 = arith.constant 0 : index
      %c0_61 = arith.constant 0 : index
      %c0_62 = arith.constant 0 : index
      %98 = vector.load %arg7[%c0_60, %c0_61, %c0_62] : memref<1x8x32xf32, #tpu.memory_space<vmem>>, vector<1x8x32xf32>
      tpu.vector_store %arg7[%c0_60, %c0_61, %c0_62], %97 {strides = array<i32>} : memref<1x8x32xf32, #tpu.memory_space<vmem>>, vector<1x8x32xf32>,
    } else {
    }
    return
  }
  func.func @transform_0(%arg0: i32, %arg1: i32, %arg2: i32) -> (i32, i32, i32) {
    %c0_i32 = arith.constant 0 : i32
    %c0_i32_0 = arith.constant 0 : i32
    return %arg0, %arg1, %c0_i32 : i32, i32, i32
  }
  func.func @transform_1(%arg0: i32, %arg1: i32, %arg2: i32) -> (i32, i32, i32) {
    %c0_i32 = arith.constant 0 : i32
    %c0_i32_0 = arith.constant 0 : i32
    return %arg0, %c0_i32, %arg2 : i32, i32, i32
  }
  func.func @transform_2(%arg0: i32, %arg1: i32, %arg2: i32) -> (i32, i32, i32) {
    %c0_i32 = arith.constant 0 : i32
    %c0_i32_0 = arith.constant 0 : i32
    return %arg0, %arg2, %c0_i32 : i32, i32, i32
  }
  func.func @transform_3(%arg0: i32, %arg1: i32, %arg2: i32) -> (i32, i32) {
    %c0_i32 = arith.constant 0 : i32
    %c0_i32_0 = arith.constant 0 : i32
    %c0_i32_1 = arith.constant 0 : i32
    return %c0_i32, %c0_i32_0 : i32, i32
  }
  func.func @transform_4(%arg0: i32, %arg1: i32, %arg2: i32) -> (i32, i32, i32) {
    %c0_i32 = arith.constant 0 : i32
    %c0_i32_0 = arith.constant 0 : i32
    return %arg0, %arg1, %c0_i32 : i32, i32, i32
  }
}

</mosaic_0001>

<bundles_post_ra>
// kernel: tpu_custom_call.1
= control target key start
LH: loop header
LB: loop body
LE: loop exit
PB: predicated region body
PF: predicated region fallthrough
CT: control target
= control target key end

     0   :  { %9 = vsyncpa [#allocation6], 0  ;;  %s1899_s0 = inlined_call_operand.vmem [shape: f32[2,8,32], index: 0, kind: input, shape index: {}]   ;;  %s1900_s1 = inlined_call_operand.vmem [shape: f32[2,32,8], index: 1, kind: input, shape index: {}]   ;;  %s1901_s2 = inlined_call_operand.vmem [shape: f32[2,8,32], index: 2, kind: input, shape index: {}]   ;;  %s1902_s3 = inlined_call_operand.vmem [shape: f32[32,1], index: 3, kind: input, shape index: {}]   ;;  %s1903_s4 = inlined_call_operand.hbm [shape: f32[2,8,32], index: 4, kind: output, shape index: {}]  }
   0x1   :  { %11 = vsyncpa [#allocation6 + $0x1], 0  ;;  %s1432_s15 = smov 0   ;;  %s1434_s16 = smov 0  }
   0x2   :  { %s1436_s17 = smov 0   ;;  %s1438_s18 = smov 0  }
   0x3   :  { %s1440_s19 = smov 0   ;;  %s1442_s20 = smov 0  }
   0x4 LB: > { %s1154_s21 = sadd.s32 4294967295, %s1400_s20   ;;  %s1155_s22 = sadd.s32 4294967294, %s1400_s20   ;;  %s1400_s20 = sphi %s1442_s20, %s17_s20   ;;  %s1396_s19 = sphi %s1440_s19, %s1910_s19   ;;  %s1392_s18 = sphi %s1438_s18, %s1909_s18   ;;  %s1388_s17 = sphi %s1436_s17, %s1908_s17   ;;  %s1384_s16 = sphi %s1434_s16, %s1907_s16   ;;  %s1380_s15 = sphi %s1432_s15, %s1906_s15  }
   0x5   : > { %s36_s23 = sadd.s32 1, %s1396_s19  ;;  %s150_s24 = sadd.s32 1, %s1388_s17 }
   0x6   : > { %p38_p0 = scmp.ge.s32.totalorder %s36_s23, 2  ;;  %p160_p1 = scmp.ne.s32.totalorder %s1388_s17, %s1384_s16 }
   0x7   : > { %p161_p2 = scmp.eq.s32.totalorder %s1154_s21, 1  ;;  %p166_p3 = scmp.ne.s32.totalorder %s1384_s16, %s1380_s15 }
   0x8   : > { %s1912_s23 = smov (%p38_p0, %s36_s23), 0  ;;  %p167_p5 = scmp.eq.s32.totalorder %s1155_s22, 1 }
   0x9   : > { %p1472_p4 = por %p161_p2, %p160_p1  ;;  %s145_s26 = ssub.s32 %s1396_s19, %s1912_s23 }
   0xa   : > { %p1158_p6 = scmp.ge.s32.totalorder %s1400_s20, 1  ;;  %p148_p7 = scmp.eq.s32.totalorder %s145_s26, 0 }
   0xb   : > { %p1479_p8 = por %p167_p5, %p166_p3  ;;  %p219_p9 = scmp.lt.s32.totalorder %s1400_s20, 3 }
   0xc   : > { %s1485_s28 = scalar_select %p148_p7, %s1388_s17, %s150_s24  }
   0xd   : > { %p220_p10 = pnand %p1158_p6, %p219_p9 }
   0xe   : > { %p262_p11 = scmp.lt.s32.totalorder (!%p220_p10), %s1392_s18, 1  ;;  %v299_v0 = vlaneseq (!%p220_p10)  ;;  %v1402_v1 = vmov (!%p220_p10), 0   ;;  %v293_v20 = vld [vmem:[%s1902_s3] sm:$0xff] (!%p220_p10)  ;;  %v294_v21 = vld [vmem:[%s1902_s3 + $0x8] sm:$0xff] (!%p220_p10)  ;;  %v295_v22 = vld [vmem:[%s1902_s3 + $0x10] sm:$0xff] (!%p220_p10)  ;;  %vm288_vm0 = vcmask (!%p220_p10), 7168  }
   0xf   : > { %223 = sbr.rel (%p220_p10) target bundleno = 893 (0x37d), region = 36  ;;  %1236 = vset.pattern.permute.xlu1 (!%p220_p10), %v1402_v1  ;;  %1237 = vset.pattern.permute.xlu0 (!%p220_p10), %v1402_v1  ;;  %v296_v23 = vld [vmem:[%s1902_s3 + $0x18] sm:$0xff] (!%p220_p10)  ;;  %v1403_v32 = vmov (!%p220_p10), -inf   ;;  %vm384_vm1 = vcmask (!%p220_p10), 64512   ;;  %vm836_vm2 = vcmask (!%p220_p10), 1041409   ;;  %vm838_vm3 = vcmask (!%p220_p10), 1042434  }
  0x10   : > { %v300_v2 = vshrl.u32 (!%p220_p10), %v299_v0, 7  ;;  %289 = vst.msk [vmem:[#allocation2] sm:$0xff] (!%p220_p10), %vm288_vm0, %v1403_v32  ;;  %vm840_vm4 = vcmask (!%p220_p10), 1043459   ;;  %vm842_vm5 = vcmask (!%p220_p10), 1044484   ;;  %vm844_vm6 = vcmask (!%p220_p10), 1045509   ;;  %s1166_s9 = sshll.u32 (!%p220_p10), %s1392_s18, 7 }
  0x11   : > { %vm846_vm7 = vcmask (!%p220_p10), 1046534   ;;  %vm848_vm8 = vcmask (!%p220_p10), 1047559   ;;  %vm291_vm9 = vcmask (!%p220_p10), 261120   ;;  %vm1405_vm10 = vmmov (!%p220_p10), 0   ;;  %s1851_s14 = scalar_lea.hbm (!%p220_p10), %s1903_s4, %s1166_s9 }
  0x12   : > { %v301_v3 = vsub.s32 (!%p220_p10), 0, %v300_v2  ;;  %v308_v4 = vsub.s32 (!%p220_p10), 1, %v300_v2  ;;  %v315_v8 = vsub.s32 (!%p220_p10), 2, %v300_v2  ;;  %v322_v10 = vsub.s32 (!%p220_p10), 3, %v300_v2 }
  0x13   : > { %v329_v12 = vsub.s32 (!%p220_p10), 4, %v300_v2  ;;  %v336_v14 = vsub.s32 (!%p220_p10), 5, %v300_v2  ;;  %v343_v16 = vsub.s32 (!%p220_p10), 6, %v300_v2  ;;  %v350_v18 = vsub.s32 (!%p220_p10), 7, %v300_v2 }
  0x16   : > { %s1489_s29 = scalar_select %p262_p11, %s1392_s18, 1 }
  0x17   : > { %s1406_s18 = smov [#allocation5]  }
  0x18   : > { %s1160_s30 = sshll.u32 %s1489_s29, 3  ;;  %s1169_s22 = sshll.u32 %s1489_s29, 5 }
  0x19   : > { %s268_s7 = scalar_lea.vmem %s1899_s0, %s1160_s30  ;;  %s1514_s5 = scalar_lea.vmem %s1900_s1, %s1169_s22 }
  0x1a   : > { %v297_v5 = vld [vmem:[%s268_s7] sm:$0xff]  ;;  %v1517_v40 = vld [vmem:[%s1514_s5 + $0x8] sm:$0xff]  ;;  %v1529_v51 = vld [vmem:[%s1514_s5 + $0x10] sm:$0xff]  ;;  %s283_s8 = scalar_lea.vmem %s1901_s2, %s1160_s30  ;;  %s259_s29 = sand.u32 1, %s1384_s16  }
  0x1b   : > { %v302_v6 = vrot.slane %v297_v5, %v301_v3  ;;  %v309_v7 = vrot.slane %v297_v5, %v308_v4  ;;  %v316_v9 = vrot.slane %v297_v5, %v315_v8  ;;  %v323_v11 = vrot.slane %v297_v5, %v322_v10  ;;  %v1520_v41 = vld [vmem:[%s1514_s5] sm:$0xff]  ;;  %v1540_v0 = vld [vmem:[%s1514_s5 + $0x18] sm:$0xff]  ;;  %s1159_s30 = sshll.u32 %s259_s29, 3  ;;  %s1033_s21 = scalar_lea.sflag [#allocation6], %s259_s29 }
  0x1c   : > { %v330_v13 = vrot.slane %v297_v5, %v329_v12  ;;  %v337_v15 = vrot.slane %v297_v5, %v336_v14  ;;  %v344_v17 = vrot.slane %v297_v5, %v343_v16  ;;  %v351_v19 = vrot.slane %v297_v5, %v350_v18  ;;  %s261_s10 = scalar_lea.vmem [#allocation5], %s1159_s30  ;;  %s1326_s24 = sshll.u32 %s1406_s18, 4  ;;  %s1327_s24 = int_to_ptr.vmem [resolvable:$false] %s1326_s24 }
  0x1d   : > { %452 = vbcast.lane.b32.xlu1 %v302_v6, 264  ;;  %304 = vbcast.lane.b32.xlu0 %v302_v6, 256  ;;  %s1047_s11 = sshll.u32 %s261_s10, 4  ;;  %s1328_s26 = scalar_lea.vmem %s1327_s24, 256  ;;  %s1853_s11 = int_to_ptr.vmem [resolvable:$true] %s1047_s11 }
  0x1e   : > { %s1322_s22 = scalar_lea.vmem %s1853_s11, 128  ;;  %p1329_p1 = scmp.lt.s32.totalorder %s1853_s11, %s1327_s24 }
  0x1f   : > { %p1323_p12 = scmp.ne.s32.totalorder %s1853_s11, %s1322_s22  ;;  %p1330_p2 = scmp.lt.s32.totalorder %s1328_s26, %s1322_s22 }
  0x21   : > { %456 = vbcast.lane.b32.xlu1 %v309_v7, 264  ;;  %311 = vbcast.lane.b32.xlu0 %v309_v7, 256  ;;  %p1324_p13 = pnand %p1323_p12, %p1472_p4  ;;  %p1331_p3 = por %p1330_p2, %p1329_p1 }
  0x23   : > { %p1325_p0 = pneg %p1324_p13 }
  0x25   : > { %460 = vbcast.lane.b32.xlu1 %v316_v9, 264  ;;  %318 = vbcast.lane.b32.xlu0 %v316_v9, 256  ;;  %p1332_p5 = pnand %p1331_p3, %p1325_p0 }
  0x29   : > { %464 = vbcast.lane.b32.xlu1 %v323_v11, 264  ;;  %325 = vbcast.lane.b32.xlu0 %v323_v11, 256 }
  0x2d   : > { %582 = vbcast.lane.b32.xlu1 %v309_v7, 272  ;;  %578 = vbcast.lane.b32.xlu0 %v302_v6, 272 }
  0x31   : > { %468 = vbcast.lane.b32.xlu1 %v330_v13, 264  ;;  %332 = vbcast.lane.b32.xlu0 %v330_v13, 256 }
  0x35   : > { %339 = vbcast.lane.b32.xlu1 %v337_v15, 256  ;;  %586 = vbcast.lane.b32.xlu0 %v316_v9, 272 }
  0x39   : > { %590 = vbcast.lane.b32.xlu1 %v323_v11, 272  ;;  %472 = vbcast.lane.b32.xlu0 %v337_v15, 264 }
  0x3d   : > { %708 = vbcast.lane.b32.xlu1 %v309_v7, 280  ;;  %704 = vbcast.lane.b32.xlu0 %v302_v6, 280 }
  0x41   : > { %476 = vbcast.lane.b32.xlu1 %v344_v17, 264  ;;  %346 = vbcast.lane.b32.xlu0 %v344_v17, 256 }
  0x45   : > { %712 = vbcast.lane.b32.xlu1 %v316_v9, 280  ;;  %594 = vbcast.lane.b32.xlu0 %v330_v13, 272 }
  0x49   : > { %373 = vperm.xlu1 %1236, %v293_v20   ;;  %353 = vbcast.lane.b32.xlu0 %v351_v19, 256 }
  0x4d   : > { %500 = vperm.xlu1 %1236, %v294_v21   ;;  %480 = vbcast.lane.b32.xlu0 %v351_v19, 264 }
  0x51   : > { %716 = vbcast.lane.b32.xlu1 %v323_v11, 280  ;;  %598 = vbcast.lane.b32.xlu0 %v337_v15, 272 }
  0x55   : > { %720 = vbcast.lane.b32.xlu1 %v330_v13, 280  ;;  %602 = vbcast.lane.b32.xlu0 %v344_v17, 272 }
  0x59   : > { %626 = vperm.xlu1 %1236, %v295_v22   ;;  %606 = vbcast.lane.b32.xlu0 %v351_v19, 272 }
  0x5d   : > { %728 = vbcast.lane.b32.xlu1 %v344_v17, 280  ;;  %724 = vbcast.lane.b32.xlu0 %v337_v15, 280 }
  0x61   : > { %752 = vperm.xlu1 %1236, %v296_v23   ;;  %732 = vbcast.lane.b32.xlu0 %v351_v19, 280 }
  0x8f   : > { %v453_v24 = vpop.permute.xlu1 %452  ;;  %v305_v25 = vpop.permute.xlu0 %304 }
  0x90   : > { %v482_v43 = vadd.f32 %v453_v24, %v1517_v40  ;;  %v355_v45 = vadd.f32 %v305_v25, %v1520_v41 }
  0x92   : > { %1238 = vtanh.f32 %v482_v43 }
  0x93   : > { %v457_v26 = vpop.permute.xlu1 %456  ;;  %v312_v27 = vpop.permute.xlu0 %311  ;;  %1240 = vtanh.f32 %v355_v45 }
  0x94   : > { %v483_v46 = vadd.f32 %v457_v26, %v1517_v40  ;;  %v356_v48 = vadd.f32 %v312_v27, %v1520_v41 }
  0x96   : > { %1242 = vtanh.f32 %v483_v46 }
  0x97   : > { %v461_v28 = vpop.permute.xlu1 %460  ;;  %v319_v29 = vpop.permute.xlu0 %318  ;;  %1244 = vtanh.f32 %v356_v48 }
  0x98   : > { %v484_v49 = vadd.f32 %v461_v28, %v1517_v40  ;;  %v357_v50 = vadd.f32 %v319_v29, %v1520_v41 }
  0x9a   : > { %1246 = vtanh.f32 %v484_v49 }
  0x9b   : > { %v465_v30 = vpop.permute.xlu1 %464  ;;  %v326_v31 = vpop.permute.xlu0 %325  ;;  %1248 = vtanh.f32 %v357_v50 }
  0x9c   : > { %v485_v52 = vadd.f32 %v465_v30, %v1517_v40  ;;  %v358_v55 = vadd.f32 %v326_v31, %v1520_v41  ;;  %v1239_v1 = vpop.eup %1238 }
  0x9d   : > { %v1241_v4 = vpop.eup %1240 }
  0x9e   : > { %1250 = vtanh.f32 %v485_v52 }
  0x9f   : > { %v583_v33 = vpop.permute.xlu1 %582  ;;  %v579_v34 = vpop.permute.xlu0 %578  ;;  %1252 = vtanh.f32 %v358_v55 }
  0xa0   : > { %v609_v56 = vadd.f32 %v583_v33, %v1529_v51  ;;  %v608_v57 = vadd.f32 %v579_v34, %v1529_v51  ;;  %v1243_v6 = vpop.eup %1242 }
  0xa1   : > { %v1245_v8 = vpop.eup %1244 }
  0xa2   : > { %1254 = vtanh.f32 %v609_v56 }
  0xa3   : > { %v333_v35 = vpop.permute.xlu0 %332  ;;  %v469_v36 = vpop.permute.xlu1 %468  ;;  %1256 = vtanh.f32 %v608_v57 }
  0xa4   : > { %v486_v58 = vadd.f32 %v469_v36, %v1517_v40  ;;  %v359_v60 = vadd.f32 %v333_v35, %v1520_v41  ;;  %v1247_v10 = vpop.eup %1246 }
  0xa5   : > { %v1249_v14 = vpop.eup %1248 }
  0xa6   : > { %1258 = vtanh.f32 %v486_v58 }
  0xa7   : > { %v587_v37 = vpop.permute.xlu0 %586  ;;  %v340_v38 = vpop.permute.xlu1 %339  ;;  %1260 = vtanh.f32 %v359_v60 }
  0xa8   : > { %v360_v61 = vadd.f32 %v340_v38, %v1520_v41  ;;  %v610_v63 = vadd.f32 %v587_v37, %v1529_v51  ;;  %v1251_v16 = vpop.eup %1250 }
  0xa9   : > { %v1253_v17 = vpop.eup %1252 }
  0xaa   : > { %1262 = vtanh.f32 %v360_v61 }
  0xab   : > { %v473_v39 = vpop.permute.xlu0 %472  ;;  %v591_v44 = vpop.permute.xlu1 %590  ;;  %1264 = vtanh.f32 %v610_v63 }
  0xac   : > { %v611_v2 = vadd.f32 %v591_v44, %v1529_v51  ;;  %v487_v5 = vadd.f32 %v473_v39, %v1517_v40  ;;  %v1549_v19 = vpop.eup %1254 }
  0xad   : > { %v1551_v21 = vpop.eup %1256 }
  0xae   : > { %1266 = vtanh.f32 %v611_v2 }
  0xaf   : > { %v705_v42 = vpop.permute.xlu0 %704  ;;  %v709_v53 = vpop.permute.xlu1 %708  ;;  %1268 = vtanh.f32 %v487_v5 }
  0xb0   : > { %v735_v7 = vadd.f32 %v709_v53, %v1540_v0  ;;  %v734_v9 = vadd.f32 %v705_v42, %v1540_v0  ;;  %v1259_v24 = vpop.eup %1258 }
  0xb1   : > { %v1261_v29 = vpop.eup %1260 }
  0xb2   : > { %1270 = vtanh.f32 %v735_v7 }
  0xb3   : > { %v347_v47 = vpop.permute.xlu0 %346  ;;  %v477_v62 = vpop.permute.xlu1 %476  ;;  %1272 = vtanh.f32 %v734_v9 }
  0xb4   : > { %v488_v11 = vadd.f32 %v477_v62, %v1517_v40  ;;  %v361_v15 = vadd.f32 %v347_v47, %v1520_v41  ;;  %v1263_v31 = vpop.eup %1262 }
  0xb5   : > { %v1565_v37 = vpop.eup %1264 }
  0xb6   : > { %1274 = vtanh.f32 %v488_v11 }
  0xb7   : > { %v595_v54 = vpop.permute.xlu0 %594  ;;  %v713_v12 = vpop.permute.xlu1 %712  ;;  %1276 = vtanh.f32 %v361_v15 }
  0xb8   : > { %v736_v18 = vadd.f32 %v713_v12, %v1540_v0  ;;  %v612_v22 = vadd.f32 %v595_v54, %v1529_v51 }
  0xba   : > { %1278 = vtanh.f32 %v736_v18 }
  0xbb   : > { %v354_v59 = vpop.permute.xlu0 %353  ;;  %1280 = vtanh.f32 %v612_v22 }
  0xbc   : > { %v362_v30 = vadd.f32 %v354_v59, %v1520_v41  ;;  %v1570_v41 = vpop.eup %1266 }
  0xbd   : > { %v1269_v47 = vpop.eup %1268 }
  0xbe   : > { %1282 = vtanh.f32 %v362_v30  ;;  %v1575_v52 = vpop.eup %1270 }
  0xbf   : > { %v481_v3 = vpop.permute.xlu0 %480  ;;  %v1580_v56 = vpop.eup %1272 }
  0xc0   : > { %v489_v38 = vadd.f32 %v481_v3, %v1517_v40  ;;  %v1275_v60 = vpop.eup %1274 }
  0xc2   : > { %1284 = vtanh.f32 %v489_v38 }
  0xc3   : > { %v599_v13 = vpop.permute.xlu0 %598 }
  0xc4   : > { %v613_v45 = vadd.f32 %v599_v13, %v1529_v51 }
  0xc6   : > { %1286 = vtanh.f32 %v613_v45 }
  0xc7   : > { %v603_v20 = vpop.permute.xlu0 %602 }
  0xc8   : > { %v1554_v23 = vpop.permute.xlu1 %373  ;;  %v614_v48 = vadd.f32 %v603_v20, %v1529_v51 }
  0xc9   : > { %v376_v25 = vmul.f32 %v1241_v4, %v1554_v23  ;;  %v377_v26 = vmul.f32 %v1245_v8, %v1554_v23  ;;  %v378_v27 = vmul.f32 %v1249_v14, %v1554_v23  ;;  %v379_v28 = vmul.f32 %v1253_v17, %v1554_v23 }
  0xca   : > { %v380_v40 = vmul.f32 %v1261_v29, %v1554_v23  ;;  %1288 = vtanh.f32 %v614_v48  ;;  %v1596_v15 = vmul.f32 %v1263_v31, %v1554_v23 }
  0xcb   : > { %v385_v32 = vsel %vm384_vm1, %v376_v25, 0.0  ;;  %v392_v33 = vsel %vm384_vm1, %v377_v26, 0.0  ;;  %v399_v34 = vsel %vm384_vm1, %v378_v27, 0.0  ;;  %v406_v35 = vsel %vm384_vm1, %v379_v28, 0.0  ;;  %v607_v36 = vpop.permute.xlu0 %606 }
  0xcc   : > { %v386_v39 = vrot.slane %v385_v32, 4  ;;  %v393_v42 = vrot.slane %v392_v33, 4  ;;  %v400_v43 = vrot.slane %v399_v34, 4  ;;  %v1568_v44 = vpop.permute.xlu1 %500  ;;  %v407_v50 = vrot.slane %v406_v35, 4 }
  0xcd   : > { %v503_v46 = vmul.f32 %v1239_v1, %v1568_v44  ;;  %v504_v54 = vmul.f32 %v1243_v6, %v1568_v44  ;;  %v505_v55 = vmul.f32 %v1247_v10, %v1568_v44  ;;  %v506_v58 = vmul.f32 %v1251_v16, %v1568_v44  ;;  %v1277_v1 = vpop.eup %1276 }
  0xce   : > { %v387_v49 = vadd.f32 %v386_v39, %v385_v32  ;;  %v394_v53 = vadd.f32 %v393_v42, %v392_v33  ;;  %v401_v57 = vadd.f32 %v400_v43, %v399_v34  ;;  %v1584_v2 = vadd.f32 %v407_v50, %v406_v35  ;;  %v1592_v9 = vpop.eup %1278 }
  0xcf   : > { %v511_v62 = vsel %vm384_vm1, %v503_v46, 0.0  ;;  %v725_v63 = vpop.permute.xlu0 %724  ;;  %v615_v3 = vadd.f32 %v607_v36, %v1529_v51  ;;  %v1588_v6 = vsel %vm384_vm1, %v380_v40, 0.0  ;;  %v518_v7 = vsel %vm384_vm1, %v504_v54, 0.0  ;;  %v1281_v25 = vpop.eup %1280 }
  0xd0   : > { %v717_v59 = vpop.permute.xlu1 %716  ;;  %v388_v61 = vrot.slane %v387_v49, 2  ;;  %v512_v4 = vrot.slane %v511_v62, 4  ;;  %v395_v5 = vrot.slane %v394_v53, 2  ;;  %v525_v8 = vsel %vm384_vm1, %v505_v55, 0.0  ;;  %v1283_v31 = vpop.eup %1282 }
  0xd1   : > { %v402_v10 = vrot.slane %v401_v57, 2  ;;  %v519_v12 = vrot.slane %v518_v7, 4  ;;  %v532_v13 = vsel %vm384_vm1, %v506_v58, 0.0  ;;  %v1599_v51 = vmul.f32 %v1277_v1, %v1554_v23  ;;  %v1624_v43 = vpop.eup %1284 }
  0xd2   : > { %v513_v11 = vadd.f32 %v512_v4, %v511_v62  ;;  %v1601_v16 = vadd.f32 %v388_v61, %v387_v49  ;;  %v507_v17 = vmul.f32 %v1259_v24, %v1568_v44  ;;  %v409_v18 = vrot.slane %v1584_v2, 2  ;;  %v1287_v49 = vpop.eup %1286 }
  0xd3   : > { %v414_v20 = vrot.slane %v1588_v6, 4  ;;  %1290 = vtanh.f32 %v615_v3  ;;  %v526_v22 = vrot.slane %v525_v8, 4  ;;  %v1607_v26 = vmul.f32 %v1269_v47, %v1568_v44  ;;  %v733_v30 = vpop.permute.xlu0 %732 }
  0xd4   : > { %v721_v14 = vpop.permute.xlu1 %720  ;;  %v1610_v27 = vmul.f32 %v1275_v60, %v1568_v44  ;;  %v520_v28 = vadd.f32 %v519_v12, %v518_v7  ;;  %v533_v29 = vrot.slane %v532_v13, 4  ;;  %v396_v32 = vadd.f32 %v395_v5, %v394_v53  ;;  %v1636_v54 = vpop.eup %1288 }
  0xd5   : > { %v1612_v33 = vadd.f32 %v402_v10, %v401_v57  ;;  %v514_v24 = vrot.slane %v513_v11, 2  ;;  %v737_v34 = vadd.f32 %v717_v59, %v1540_v0  ;;  %v390_v36 = vrot.slane %v1601_v16, 1 }
  0xd6   : > { %v1619_v38 = vsel %vm384_vm1, %v507_v17, 0.0  ;;  %v739_v39 = vadd.f32 %v725_v63, %v1540_v0  ;;  %v527_v45 = vadd.f32 %v526_v22, %v525_v8  ;;  %v741_v46 = vadd.f32 %v733_v30, %v1540_v0 }
  0xd7   : > { %v738_v47 = vadd.f32 %v721_v14, %v1540_v0  ;;  %v521_v50 = vrot.slane %v520_v28, 2  ;;  %v1630_v40 = vadd.f32 %v533_v29, %v532_v13  ;;  %v1638_v55 = vadd.f32 %v514_v24, %v513_v11 }
  0xd8   : > { %v1615_v35 = vpop.permute.xlu1 %626  ;;  %1292 = vtanh.f32 %v737_v34  ;;  %v528_v63 = vrot.slane %v527_v45, 2  ;;  %v540_v3 = vrot.slane %v1619_v38, 4  ;;  %v383_v11 = vmul.f32 %v1283_v31, %v1554_v23 }
  0xd9   : > { %v629_v42 = vmul.f32 %v1551_v21, %v1615_v35  ;;  %v630_v48 = vmul.f32 %v1549_v19, %v1615_v35  ;;  %v631_v53 = vmul.f32 %v1565_v37, %v1615_v35  ;;  %v632_v21 = vmul.f32 %v1570_v41, %v1615_v35 }
  0xda   : > { %v397_v37 = vrot.slane %v396_v32, 1  ;;  %1294 = vtanh.f32 %v738_v47  ;;  %v1644_v1 = vadd.f32 %v521_v50, %v520_v28  ;;  %v535_v7 = vrot.slane %v1630_v40, 2 }
  0xdb   : > { %v637_v57 = vsel %vm384_vm1, %v629_v42, 0.0  ;;  %v644_v58 = vsel %vm384_vm1, %v630_v48, 0.0  ;;  %v651_v61 = vsel %vm384_vm1, %v631_v53, 0.0  ;;  %v658_v62 = vsel %vm384_vm1, %v632_v21, 0.0 }
  0xdc   : > { %v729_v19 = vpop.permute.xlu1 %728  ;;  %v638_v59 = vrot.slane %v637_v57, 4  ;;  %v645_v60 = vrot.slane %v644_v58, 4  ;;  %v652_v41 = vrot.slane %v651_v61, 4  ;;  %1296 = vtanh.f32 %v739_v39 }
  0xdd   : > { %v1647_v5 = vpop.eup %1290  ;;  %1298 = vtanh.f32 %v741_v46  ;;  %v659_v8 = vrot.slane %v658_v62, 4  ;;  %v516_v12 = vrot.slane %v1638_v55, 1  ;;  %v740_v17 = vadd.f32 %v729_v19, %v1540_v0 }
  0xde   : > { %v639_v4 = vadd.f32 %v638_v59, %v637_v57  ;;  %v646_v13 = vadd.f32 %v645_v60, %v644_v58  ;;  %v1654_v14 = vadd.f32 %v652_v41, %v651_v61  ;;  %v1657_v22 = vadd.f32 %v528_v63, %v527_v45 }
  0xdf   : > { %v1660_v28 = vmul.f32 %v1281_v25, %v1615_v35  ;;  %v404_v29 = vrot.slane %v1612_v33, 1  ;;  %v410_v30 = vadd.f32 %v409_v18, %v1584_v2  ;;  %v523_v24 = vrot.slane %v1644_v1, 1 }
  0xe0   : > { %v1650_v10 = vpop.permute.xlu1 %752  ;;  %v1666_v23 = vmul.f32 %v1287_v49, %v1615_v35  ;;  %v640_v31 = vrot.slane %v639_v4, 2  ;;  %v1670_v39 = vadd.f32 %v659_v8, %v658_v62  ;;  %v1675_v25 = vadd.f32 %v390_v36, %v1601_v16 }
  0xe1   : > { %v755_v34 = vmul.f32 %v1580_v56, %v1650_v10  ;;  %v756_v0 = vmul.f32 %v1575_v52, %v1650_v10  ;;  %v1677_v42 = vadd.f32 %v397_v37, %v396_v32  ;;  %v647_v2 = vrot.slane %v646_v13, 2 }
  0xe2   : > { %v654_v18 = vrot.slane %v1654_v14, 2  ;;  %1300 = vtanh.f32 %v740_v17  ;;  %v757_v45 = vmul.f32 %v1592_v9, %v1650_v10  ;;  %v1293_v46 = vpop.eup %1292  ;;  %v1683_v56 = vadd.f32 %v404_v29, %v1612_v33 }
  0xe3   : > { %v411_v47 = vrot.slane %v410_v30, 1  ;;  %v415_v52 = vadd.f32 %v414_v20, %v1588_v6  ;;  %v420_v16 = vsel %vm384_vm1, %v1596_v15, 0.0  ;;  %v1690_v32 = vadd.f32 %v640_v31, %v639_v4 }
  0xe4   : > { %v763_v36 = vsel %vm384_vm1, %v755_v34, 0.0  ;;  %v421_v48 = vrot.slane %v420_v16, 4  ;;  %v427_v9 = vsel %vm384_vm1, %v1599_v51, 0.0  ;;  %v1295_v49 = vpop.eup %1294  ;;  %v758_v33 = vmul.f32 %v1293_v46, %v1650_v10 }
  0xe5   : > { %v770_v50 = vsel %vm384_vm1, %v756_v0, 0.0  ;;  %v428_v53 = vrot.slane %v427_v9, 4  ;;  %v434_v21 = vsel %vm384_vm1, %v383_v11, 0.0  ;;  %v777_v15 = vsel %vm384_vm1, %v757_v45, 0.0 }
  0xe6   : > { %v1698_v6 = vpop.eup %1296  ;;  %v416_v20 = vrot.slane %v415_v52, 2  ;;  %v422_v57 = vadd.f32 %v421_v48, %v420_v16  ;;  %v435_v58 = vrot.slane %v434_v21, 4  ;;  %v1703_v59 = vadd.f32 %v647_v2, %v646_v13 }
  0xe7   : > { %v1701_v19 = vpop.eup %1298  ;;  %v764_v51 = vrot.slane %v763_v36, 4  ;;  %v1705_v60 = vadd.f32 %v411_v47, %v410_v30  ;;  %v429_v61 = vadd.f32 %v428_v53, %v427_v9  ;;  %v1708_v62 = vmul.f32 %v1295_v49, %v1650_v10 }
  0xe8   : > { %v771_v37 = vrot.slane %v770_v50, 4  ;;  %v423_v63 = vrot.slane %v422_v57, 2  ;;  %v436_v41 = vadd.f32 %v435_v58, %v434_v21  ;;  %v778_v4 = vrot.slane %v777_v15, 4 }
  0xe9   : > { %v1711_v8 = vsel %vm384_vm1, %v758_v33, 0.0  ;;  %v541_v11 = vadd.f32 %v540_v3, %v1619_v38  ;;  %v546_v13 = vsel %vm384_vm1, %v1607_v26, 0.0  ;;  %v417_v17 = vadd.f32 %v416_v20, %v415_v52 }
  0xea   : > { %v430_v29 = vrot.slane %v429_v61, 2  ;;  %v510_v30 = vmul.f32 %v1624_v43, %v1568_v44  ;;  %v536_v31 = vadd.f32 %v535_v7, %v1630_v40  ;;  %v1719_v34 = vadd.f32 %v764_v51, %v763_v36 }
  0xeb   : > { %v424_v0 = vadd.f32 %v423_v63, %v422_v57  ;;  %v437_v2 = vrot.slane %v436_v41, 2  ;;  %v547_v45 = vrot.slane %v546_v13, 4  ;;  %v1723_v47 = vadd.f32 %v771_v37, %v770_v50 }
  0xec   : > { %v1721_v46 = vpop.eup %1300  ;;  %v785_v38 = vrot.slane %v1711_v8, 4  ;;  %v542_v3 = vrot.slane %v541_v11, 2  ;;  %v553_v26 = vsel %vm384_vm1, %v1610_v27, 0.0  ;;  %v1728_v52 = vadd.f32 %v778_v4, %v777_v15 }
  0xed   : > { %v530_v44 = vrot.slane %v1657_v22, 1  ;;  %v548_v43 = vadd.f32 %v547_v45, %v546_v13  ;;  %v554_v40 = vrot.slane %v553_v26, 4  ;;  %v418_v7 = vrot.slane %v417_v17, 1 }
  0xee   : > { %v431_v16 = vadd.f32 %v430_v29, %v429_v61  ;;  %v537_v36 = vrot.slane %v536_v31, 1  ;;  %v560_v48 = vsel %vm384_vm1, %v510_v30, 0.0  ;;  %v425_v9 = vrot.slane %v424_v0, 1 }
  0xef   : > { %v438_v49 = vadd.f32 %v437_v2, %v436_v41  ;;  %v549_v33 = vrot.slane %v548_v43, 2  ;;  %v555_v50 = vadd.f32 %v554_v40, %v553_v26  ;;  %v766_v53 = vrot.slane %v1719_v34, 2 }
  0xf0   : > { %v773_v21 = vrot.slane %v1723_v47, 2  ;;  %v543_v27 = vadd.f32 %v542_v3, %v541_v11  ;;  %v561_v15 = vrot.slane %v560_v48, 4  ;;  %v517_v20 = vadd.f32 %v516_v12, %v1638_v55 }
  0xf1   : > { %v524_v57 = vadd.f32 %v523_v24, %v1644_v1  ;;  %v550_v58 = vadd.f32 %v549_v33, %v548_v43  ;;  %v556_v51 = vrot.slane %v555_v50, 2  ;;  %v419_v61 = vadd.f32 %v418_v7, %v417_v17 }
  0xf2   : > { %v531_v37 = vadd.f32 %v530_v44, %v1657_v22  ;;  %v538_v63 = vadd.f32 %v537_v36, %v536_v31  ;;  %v562_v41 = vadd.f32 %v561_v15, %v560_v48  ;;  %v426_v4 = vadd.f32 %v425_v9, %v424_v0 }
  0xf3   : > { %v432_v13 = vrot.slane %v431_v16, 1  ;;  %v439_v29 = vrot.slane %v438_v49, 1  ;;  %v635_v11 = vmul.f32 %v1636_v54, %v1615_v35  ;;  %v544_v30 = vrot.slane %v543_v27, 1 }
  0xf4   : > { %v551_v2 = vrot.slane %v550_v58, 1  ;;  %v563_v55 = vrot.slane %v562_v41, 2  ;;  %v661_v12 = vrot.slane %v1670_v39, 2  ;;  %v557_v45 = vadd.f32 %v556_v51, %v555_v50 }
  0xf5   : > { %v567_v1 = vadd.f32 %v517_v20, %v1675_v25  ;;  %v636_v24 = vmul.f32 %v1647_v5, %v1615_v35  ;;  %v665_v22 = vsel %vm384_vm1, %v1660_v28, 0.0  ;;  %v655_v31 = vadd.f32 %v654_v18, %v1654_v14 }
  0xf6   : > { %v564_v17 = vadd.f32 %v563_v55, %v562_v41  ;;  %v662_v54 = vadd.f32 %v661_v12, %v1670_v39  ;;  %v666_v0 = vrot.slane %v665_v22, 4  ;;  %v1753_v3 = vadd.f32 %v432_v13, %v431_v16 }
  0xf7   : > { %v642_v26 = vrot.slane %v1690_v32, 1  ;;  %v672_v25 = vsel %vm384_vm1, %v1666_v23, 0.0  ;;  %v679_v35 = vsel %vm384_vm1, %v635_v11, 0.0  ;;  %v545_v5 = vadd.f32 %v544_v30, %v543_v27 }
  0xf8   : > { %v552_v44 = vadd.f32 %v551_v2, %v550_v58  ;;  %v649_v28 = vrot.slane %v1703_v59, 1  ;;  %v667_v43 = vadd.f32 %v666_v0, %v665_v22  ;;  %v558_v40 = vrot.slane %v557_v45, 1 }
  0xf9   : > { %v673_v7 = vrot.slane %v672_v25, 4  ;;  %v680_v14 = vrot.slane %v679_v35, 4  ;;  %v686_v39 = vsel %vm384_vm1, %v636_v24, 0.0  ;;  %v565_v18 = vrot.slane %v564_v17, 1 }
  0xfa   : > { %v656_v16 = vrot.slane %v655_v31, 1  ;;  %v663_v36 = vrot.slane %v662_v54, 1  ;;  %v687_v48 = vrot.slane %v686_v39, 4  ;;  %v1761_v9 = vadd.f32 %v439_v29, %v438_v49 }
  0xfb   : > { %v568_v23 = vadd.f32 %v524_v57, %v1677_v42  ;;  %v643_v33 = vadd.f32 %v642_v26, %v1690_v32  ;;  %v668_v50 = vrot.slane %v667_v43, 2  ;;  %v569_v27 = vadd.f32 %v531_v37, %v1683_v56 }
  0xfc   : > { %v1767_v15 = vadd.f32 %v538_v63, %v1705_v60  ;;  %v650_v20 = vadd.f32 %v649_v28, %v1703_v59  ;;  %v674_v58 = vadd.f32 %v673_v7, %v672_v25  ;;  %v1770_v51 = vadd.f32 %v558_v40, %v557_v45 }
  0xfd   : > { %v1772_v41 = vadd.f32 %v545_v5, %v419_v61  ;;  %v1774_v13 = vadd.f32 %v552_v44, %v426_v4  ;;  %v681_v49 = vadd.f32 %v680_v14, %v679_v35  ;;  %v1776_v29 = vadd.f32 %v565_v18, %v564_v17 }
  0xfe   : > { %v657_v42 = vadd.f32 %v656_v16, %v655_v31  ;;  %v664_v32 = vadd.f32 %v663_v36, %v662_v54  ;;  %v688_v57 = vadd.f32 %v687_v48, %v686_v39  ;;  %v669_v11 = vadd.f32 %v668_v50, %v667_v43 }
  0xff   : > { %v693_v56 = vadd.f32 %v643_v33, %v567_v1  ;;  %v767_v60 = vadd.f32 %v766_v53, %v1719_v34  ;;  %v774_v37 = vadd.f32 %v773_v21, %v1723_v47  ;;  %v675_v59 = vrot.slane %v674_v58, 2 }
 0x100   : > { %v694_v63 = vadd.f32 %v650_v20, %v568_v23  ;;  %v780_v30 = vrot.slane %v1728_v52, 2  ;;  %v786_v61 = vadd.f32 %v785_v38, %v1711_v8  ;;  %v682_v4 = vrot.slane %v681_v49, 2 }
 0x101   : > { %v760_v2 = vmul.f32 %v1698_v6, %v1650_v10  ;;  %v768_v55 = vrot.slane %v767_v60, 1  ;;  %v775_v12 = vrot.slane %v774_v37, 1  ;;  %v689_v45 = vrot.slane %v688_v57, 2 }
 0x102   : > { %v695_v1 = vadd.f32 %v657_v42, %v569_v27  ;;  %v781_v34 = vadd.f32 %v780_v30, %v1728_v52  ;;  %v787_v47 = vrot.slane %v786_v61, 2  ;;  %v670_v53 = vrot.slane %v669_v11, 1 }
 0x103   : > { %v761_v21 = vmul.f32 %v1721_v46, %v1650_v10  ;;  %v762_v8 = vmul.f32 %v1701_v19, %v1650_v10  ;;  %v769_v38 = vadd.f32 %v768_v55, %v767_v60  ;;  %v676_v24 = vadd.f32 %v675_v59, %v674_v58 }
 0x104   : > { %v782_v22 = vrot.slane %v781_v34, 1  ;;  %v788_v17 = vadd.f32 %v787_v47, %v786_v61  ;;  %v791_v6 = vsel %vm384_vm1, %v1708_v62, 0.0  ;;  %v683_v31 = vadd.f32 %v682_v4, %v681_v49 }
 0x105   : > { %v776_v54 = vadd.f32 %v775_v12, %v774_v37  ;;  %v792_v0 = vrot.slane %v791_v6, 4  ;;  %v798_v52 = vsel %vm384_vm1, %v760_v2, 0.0  ;;  %v690_v26 = vadd.f32 %v689_v45, %v688_v57 }
 0x106   : > { %v783_v25 = vadd.f32 %v782_v22, %v781_v34  ;;  %v789_v35 = vrot.slane %v788_v17, 1  ;;  %v799_v46 = vrot.slane %v798_v52, 4  ;;  %v805_v10 = vsel %vm384_vm1, %v761_v21, 0.0 }
 0x107   : > { %v793_v5 = vadd.f32 %v792_v0, %v791_v6  ;;  %v812_v19 = vsel %vm384_vm1, %v762_v8, 0.0  ;;  %v1796_v44 = vadd.f32 %v769_v38, %v693_v56  ;;  %v677_v28 = vrot.slane %v676_v24, 1 }
 0x108   : > { %v800_v43 = vadd.f32 %v799_v46, %v798_v52  ;;  %v806_v62 = vrot.slane %v805_v10, 4  ;;  %v813_v40 = vrot.slane %v812_v19, 4  ;;  %v684_v7 = vrot.slane %v683_v31, 1 }
 0x109   : > { %v794_v14 = vrot.slane %v793_v5, 2  ;;  %v1798_v39 = vadd.f32 %v776_v54, %v694_v63  ;;  %v1800_v18 = vadd.f32 %v783_v25, %v695_v1  ;;  %v790_v16 = vadd.f32 %v789_v35, %v788_v17  ;;  %v939_v35 = vld [vmem:[%s283_s8] sm:$0xff] }
 0x10a   : > { %v801_v36 = vrot.slane %v800_v43, 2  ;;  %v807_v48 = vadd.f32 %v806_v62, %v805_v10  ;;  %v814_v23 = vadd.f32 %v813_v40, %v812_v19  ;;  %v671_v33 = vadd.f32 %v670_v53, %v669_v11 }
 0x10b   : > { %v691_v50 = vrot.slane %v690_v26, 1  ;;  %v795_v27 = vadd.f32 %v794_v14, %v793_v5  ;;  %v837_v20 = vsel %vm836_vm2, %v1798_v39, %v1796_v44  ;;  %v696_v58 = vadd.f32 %v664_v32, %v1767_v15 }
 0x10c   : > { %v802_v49 = vadd.f32 %v801_v36, %v800_v43  ;;  %v808_v42 = vrot.slane %v807_v48, 2  ;;  %v815_v57 = vrot.slane %v814_v23, 2  ;;  %v678_v56 = vadd.f32 %v677_v28, %v676_v24 }
 0x10d   : > { %v685_v60 = vadd.f32 %v684_v7, %v683_v31  ;;  %v796_v37 = vrot.slane %v795_v27, 1  ;;  %v839_v59 = vsel %vm838_vm3, %v1800_v18, %v837_v20  ;;  %v822_v61 = vadd.f32 %v790_v16, %v696_v58  ;;  %v827_v31 = vld [vmem:[#allocation2] sm:$0xff] }
 0x10e   : > { %v803_v63 = vrot.slane %v802_v49, 1  ;;  %v809_v30 = vadd.f32 %v808_v42, %v807_v48  ;;  %v816_v11 = vadd.f32 %v815_v57, %v814_v23  ;;  %v573_v4 = vadd.f32 %v1770_v51, %v1753_v3 }
 0x10f   : > { %v692_v2 = vadd.f32 %v691_v50, %v690_v26  ;;  %v697_v55 = vadd.f32 %v671_v33, %v1772_v41  ;;  %v797_v15 = vadd.f32 %v796_v37, %v795_v27  ;;  %v841_v1 = vsel %vm840_vm4, %v822_v61, %v839_v59 }
 0x110   : > { %v804_v32 = vadd.f32 %v803_v63, %v802_v49  ;;  %v810_v12 = vrot.slane %v809_v30, 1  ;;  %v817_v45 = vrot.slane %v816_v11, 1  ;;  %v574_v34 = vadd.f32 %v1776_v29, %v1761_v9 }
 0x111   : > { %v698_v47 = vadd.f32 %v678_v56, %v1774_v13  ;;  %v823_v53 = vadd.f32 %v797_v15, %v697_v55  ;;  %v699_v21 = vadd.f32 %v685_v60, %v573_v4  ;;  %v1404_v29 = vmov 0.0  }
 0x112   : > { %v811_v8 = vadd.f32 %v810_v12, %v809_v30  ;;  %v818_v38 = vadd.f32 %v817_v45, %v816_v11  ;;  %v700_v3 = vadd.f32 %v692_v2, %v574_v34  ;;  %290 = vst.msk [vmem:[#allocation3] sm:$0xff] %vm288_vm0, %v1404_v29  ;;  %1172 = vmatprep.subr.mxu0 %v1404_v29 }
 0x113   : > { %v824_v51 = vadd.f32 %v804_v32, %v698_v47  ;;  %v843_v41 = vsel %vm842_vm5, %v823_v53, %v841_v1  ;;  %292 = vst.msk [vmem:[#allocation4] sm:$0xff] %vm291_vm9, %v1404_v29  ;;  %1174 = vmatprep.mubr.msk.f32.mxu0 %vm1405_vm10, %v1404_v29  ;;  %1173 = vmatpush3.msra.mxu0 %v939_v35 }
 0x114   : > { %v825_v24 = vadd.f32 %v811_v8, %v699_v21  ;;  %v826_v22 = vadd.f32 %v818_v38, %v700_v3 }
 0x115   : > { %v845_v17 = vsel %vm844_vm6, %v824_v51, %v843_v41 }
 0x116   : > { %v847_v6 = vsel %vm846_vm7, %v825_v24, %v845_v17 }
 0x117   : > { %v849_v9 = vsel %vm848_vm8, %v826_v22, %v847_v6 }
 0x118   : > { %v851_v13 = vsel %vm384_vm1, %v849_v9, -inf }
 0x119   : > { %852 = vmax.xlane.f32.xlu0 %v851_v13  ;;  %v901_v3 = vld [vmem:[#allocation3] sm:$0xff] }
 0x11a   : > { %v932_v29 = vld [vmem:[#allocation4] sm:$0xff] }
 0x1a6   : > { %v853_v54 = vpop.xlane.xlu0 %852 }
 0x1a7   : > { %v854_v0 = vmax.f32 %v827_v31, %v853_v54 }
 0x1a9   : > { %v855_v52 = vsub.f32 %v827_v31, %v854_v0  ;;  %1015 = vst.msk [vmem:[#allocation2] sm:$0xff] %vm288_vm0, %v854_v0  ;;  %860 = vperm.xlu1 %1236, %v854_v0  }
 0x1ab   : > { %v856_v26 = vmul.f32 1.442695, %v855_v52 }
 0x1ad   : > { %1302 = vpow2.f32 %v856_v26 }
 0x1b7   : > { %v1823_v25 = vpop.eup %1302 }
 0x1b8   : > { %935 = vperm.xlu0 %1237, %v1823_v25  }
 0x228   : > { %v861_v46 = vpop.permute.xlu1 %860 }
 0x229   : > { %v862_v5 = vrot.slane %v861_v46, 1  ;;  %v863_v10 = vrot.slane %v861_v46, 2  ;;  %v864_v19 = vrot.slane %v861_v46, 3  ;;  %v865_v28 = vrot.slane %v861_v46, 4 }
 0x22a   : > { %v877_v43 = vsub.f32 %v1796_v44, %v861_v46  ;;  %v866_v62 = vrot.slane %v861_v46, 5  ;;  %v867_v40 = vrot.slane %v861_v46, 6  ;;  %v868_v7 = vrot.slane %v861_v46, 7 }
 0x22b   : > { %v878_v14 = vsub.f32 %v1798_v39, %v862_v5  ;;  %v879_v16 = vsub.f32 %v1800_v18, %v863_v10  ;;  %v880_v36 = vsub.f32 %v822_v61, %v864_v19  ;;  %v881_v48 = vsub.f32 %v823_v53, %v865_v28 }
 0x22c   : > { %v885_v23 = vmul.f32 1.442695, %v877_v43  ;;  %v882_v33 = vsub.f32 %v824_v51, %v866_v62  ;;  %v883_v50 = vsub.f32 %v825_v24, %v867_v40  ;;  %v884_v58 = vsub.f32 %v826_v22, %v868_v7 }
 0x22d   : > { %v887_v27 = vmul.f32 1.442695, %v878_v14  ;;  %v889_v20 = vmul.f32 1.442695, %v879_v16  ;;  %v891_v49 = vmul.f32 1.442695, %v880_v36  ;;  %v902_v51 = vmul.f32 %v1823_v25, %v901_v3 }
 0x22e   : > { %1304 = vpow2.f32 %v885_v23  ;;  %v893_v42 = vmul.f32 1.442695, %v881_v48  ;;  %v895_v44 = vmul.f32 1.442695, %v882_v33  ;;  %v897_v57 = vmul.f32 1.442695, %v883_v50 }
 0x22f   : > { %1306 = vpow2.f32 %v887_v27  ;;  %v899_v56 = vmul.f32 1.442695, %v884_v58 }
 0x230   : > { %1308 = vpow2.f32 %v889_v20 }
 0x231   : > { %1310 = vpow2.f32 %v891_v49 }
 0x232   : > { %1312 = vpow2.f32 %v893_v42 }
 0x233   : > { %1314 = vpow2.f32 %v895_v44 }
 0x234   : > { %1316 = vpow2.f32 %v897_v57 }
 0x235   : > { %1318 = vpow2.f32 %v899_v56 }
 0x237   : > { %v936_v31 = vpop.permute.xlu0 %935 }
 0x238   : > { %v1305_v39 = vpop.eup %1304  ;;  %v938_v54 = vmul.f32 %v936_v31, %v932_v29 }
 0x239   : > { %v1307_v18 = vpop.eup %1306 }
 0x23a   : > { %v1309_v60 = vpop.eup %1308  ;;  %v911_v37 = vrot.slane %v1307_v18, 7 }
 0x23b   : > { %v1311_v59 = vpop.eup %1310  ;;  %v913_v63 = vrot.slane %v1309_v60, 6 }
 0x23c   : > { %v1313_v30 = vpop.eup %1312  ;;  %v912_v11 = vsel %vm836_vm2, %v911_v37, %v1305_v39  ;;  %v915_v61 = vrot.slane %v1311_v59, 5 }
 0x23d   : > { %v1315_v4 = vpop.eup %1314  ;;  %v914_v2 = vsel %vm838_vm3, %v913_v63, %v912_v11  ;;  %v917_v55 = vrot.slane %v1313_v30, 4 }
 0x23e   : > { %v1317_v15 = vpop.eup %1316  ;;  %v916_v32 = vsel %vm840_vm4, %v915_v61, %v914_v2  ;;  %v919_v12 = vrot.slane %v1315_v4, 3 }
 0x23f   : > { %v1319_v45 = vpop.eup %1318  ;;  %v918_v1 = vsel %vm842_vm5, %v917_v55, %v916_v32  ;;  %v921_v34 = vrot.slane %v1317_v15, 2 }
 0x240   : > { %v920_v47 = vsel %vm844_vm6, %v919_v12, %v918_v1  ;;  %v923_v53 = vrot.slane %v1319_v45, 1 }
 0x241   : > { %v922_v21 = vsel %vm846_vm7, %v921_v34, %v920_v47 }
 0x242   : > { %v924_v8 = vsel %vm848_vm8, %v923_v53, %v922_v21 }
 0x243   : > { %1175 = vmatmul.mubr.msk.f32.vlgmr.msra.gmra.mrb[0].mxu0 %vm384_vm1, %v924_v8  ;;  %v926_v38 = vsel %vm384_vm1, %v924_v8, 0.0 }
 0x244   : > { %927 = vadd.xlane.f32.xlu1 %v926_v38 }
 0x2d1   : > { %v928_v41 = vpop.xlane.xlu1 %927 }
 0x2d2   : > { %v929_v24 = vadd.f32 %v928_v41, %v902_v51 }
 0x2d4   : > { %931 = vst.msk [vmem:[#allocation3] sm:$0xff] %vm288_vm0, %v929_v24 }
 0x2db   : > { %v1019_v22 = vld [vmem:[#allocation3] sm:$0xff] }
 0x2dc   : > { %1320 = vrcp.f32 %v1019_v22 }
 0x2e6   : > { %v1321_v17 = vpop.eup %1320 }
 0x2e7   : > { %v1021_v6 = vmul.f32 %v1321_v17, %v1019_v22 }
 0x2e9   : > { %v1022_v9 = vsub.f32 2.0, %v1021_v6 }
 0x2eb   : > { %v1023_v13 = vmul.f32 %v1321_v17, %v1022_v9 }
 0x2ed   : > { %1027 = vperm.xlu1 %1236, %v1023_v13  }
 0x316   : > { %v1008_v0 = vpop.f32.mrb[0].mxu0 }
 0x317   : > { %v1012_v52 = vadd.f32 %v1008_v0, %v938_v54  ;;  %v1176_v26 = vpop.f32.mrb[1].mxu0 }
 0x319   : > { %1014 = vst.msk [vmem:[#allocation4] sm:$0xff] %vm291_vm9, %v1012_v52 }
 0x320   : > { %v1024_v25 = vld [vmem:[#allocation4] sm:$0xff] }
 0x36c   : > { %v1028_v35 = vpop.permute.xlu1 %1027 }
 0x36d   : > { %v1030_v46 = vmul.f32 %v1028_v35, %v1024_v25 }
 0x36f   : > { %1031 = vst.msk [vmem:[%s261_s10] sm:$0xff] %vm291_vm9, %v1030_v46 }
 0x370   : > { %1335 = shalt.err (!%p1332_p5)
}
 0x371   : > { %s1336_s5 = scalar_lea.hbm %s1851_s14, 128  ;;  %s1340_s8 = scalar_lea.hbm %s1903_s4, 256 }
 0x372   : > { %p1337_p6 = scmp.ne.s32.totalorder %s1851_s14, %s1336_s5  ;;  %p1341_p10 = scmp.lt.u32.totalorder %s1851_s14, %s1903_s4 }
 0x373   : > { %p1342_p11 = scmp.lt.u32.totalorder %s1340_s8, %s1336_s5  ;;  %p1344_p13 = scmp.lt.u32.totalorder %s1336_s5, %s1851_s14 }
 0x374   : > { %p1338_p7 = pnand %p1337_p6, %p1472_p4 }
 0x375   : > { %p1343_p12 = por %p1342_p11, %p1341_p10 }
 0x376   : > { %p1339_p9 = pneg %p1338_p7 }
 0x377   : > { %p1345_p0 = por %p1344_p13, %p1343_p12 }
 0x379   : > { %p1346_p1 = pnand %p1345_p0, %p1339_p9 }
 0x37b   : > { %1349 = shalt.err (!%p1346_p1)
}
 0x37c   : > { %1177 = dma.vmem_to_hbm [thread:$0]  (%p1472_p4), %s1853_s11, 128, %s1851_s14, %s1033_s21  }
 0x37d PF: > { %p1183_p2 = scmp.ge.s32.totalorder %s1400_s20, 2  ;;  %s1059_s9 = sand.u32 1, %s1380_s15  }
 0x37e   : > { %s1060_s10 = scalar_lea.sflag [#allocation6], %s1059_s9 }
 0x37f   : > { %p1180_p3 = pnand %p1183_p2, %p1479_p8 }
 0x381   : > { %1375 = dma.done.wait (!%p1180_p3), %s1060_s10, 128  }
 0x382   : > { %1377 = vsyncadd (!%p1180_p3), %s1060_s10, 4294967168  ;;  %s17_s20 = sadd.s32 1, %s1400_s20   ;;  %s1906_s15 = smov %s1384_s16 }
 0x383   : > { %p14_p5 = scmp.ge.s32.totalorder %s17_s20, 4   ;;  %s1907_s16 = smov %s1388_s17 }
 0x384   : > { %s1908_s17 = smov %s1485_s28  ;;  %s1909_s18 = smov %s1396_s19 }
 0x385   : > { %s1910_s19 = smov %s1912_s23  ;;  %16 = sbr.rel (!%p14_p5) target bundleno = 4 (0x4), region = 85 }
 0x38c   :  { %1065 = vsyncpa [#allocation6], 1 }
 0x38d   :  { %1067 = vsyncpa [#allocation6 + $0x1], 1 }

</bundles_post_ra>
